<compile_context>
chip_gen: v7x
topology: tpu7x:2x2x1
jax: 0.10.0
libtpu: 0.0.40
codegen_flags: <defaults>
</compile_context>

<pallas_src>
import jax
import jax.numpy as jnp
from jax.experimental import pallas as pl
from jax.experimental.pallas import tpu as pltpu


HIDDEN = 256      # fc1_dims == fc2_dims == 256 in the reference module
OUT_PAD = 128     # packed head output padded to one full lane tile


def _round_up(x, m):
    return (x + m - 1) // m * m


def _actor_mlp_kernel(x_ref,      # [TILE_B, D_IN]    f32
                      w1_ref,     # [D_IN, HIDDEN]    bf16
                      w2_ref,     # [HIDDEN, HIDDEN]  bf16
                      w3_ref,     # [HIDDEN, HIDDEN]  bf16
                      w4_ref,     # [HIDDEN, OUT_PAD] bf16
                      b_ref,      # [4, HIDDEN] f32 rows: b1, b2, b3, b4(pad 0)
                      out_ref):   # [TILE_B, OUT_PAD] f32 pre-activation slab
    # Layer 1: bf16 operands, f32 MXU accumulation, f32 bias/ReLU.
    h = jnp.dot(x_ref[...].astype(jnp.bfloat16), w1_ref[...],
                preferred_element_type=jnp.float32) + b_ref[0:1, :]
    h = jnp.maximum(h, 0.0)

    # Layer 2.
    h = jnp.dot(h.astype(jnp.bfloat16), w2_ref[...],
                preferred_element_type=jnp.float32) + b_ref[1:2, :]
    h = jnp.maximum(h, 0.0)

    # Layer 3.
    h = jnp.dot(h.astype(jnp.bfloat16), w3_ref[...],
                preferred_element_type=jnp.float32) + b_ref[2:3, :]
    h = jnp.maximum(h, 0.0)

    # Head: lane-dense [TILE_B, OUT_PAD] pre-activations (tanh/softplus are
    # applied in the wrapper on the real 2*n_actions lanes only).
    out_pad = out_ref.shape[-1]
    out = jnp.dot(h.astype(jnp.bfloat16), w4_ref[...],
                  preferred_element_type=jnp.float32)
    out_ref[...] = (out + b_ref[3:4, :out_pad]).astype(out_ref.dtype)


def pack_params(params, n_actions, hidden=HIDDEN, out_pad=OUT_PAD):
    """One-time repack: bf16 weights + padded head + packed f32 bias slab."""
    (w1, b1), (w2, b2), (w3, b3), (w4, b4) = params
    d_in = w1.shape[0]
    out_dim = 2 * n_actions
    assert out_dim <= out_pad <= hidden and out_pad % 128 == 0

    w4_pad = jnp.zeros((hidden, out_pad), jnp.bfloat16)
    w4_pad = w4_pad.at[:, :out_dim].set(w4.astype(jnp.bfloat16))

    b_all = jnp.zeros((4, hidden), jnp.float32)
    b_all = b_all.at[0, :].set(b1.astype(jnp.float32))
    b_all = b_all.at[1, :].set(b2.astype(jnp.float32))
    b_all = b_all.at[2, :].set(b3.astype(jnp.float32))
    b_all = b_all.at[3, :out_dim].set(b4.astype(jnp.float32))

    return dict(w1=jnp.asarray(w1, jnp.bfloat16),
                w2=jnp.asarray(w2, jnp.bfloat16),
                w3=jnp.asarray(w3, jnp.bfloat16),
                w4=w4_pad, b=b_all,
                d_in=d_in, hidden=hidden, out_pad=out_pad)


def _pick_block_b(batch):
    """Batch tile: big enough to hide ~0.35us/step overhead, >=2 tiles when
    possible so the 'parallel' grid axis can use both v7x TensorCores."""
    if batch <= 128:
        return batch                    # one tile; block dim == full array dim
    if batch <= 256:
        return 128                      # 2 MXU-native tiles -> both v7x TCs
    half = _round_up(-(-batch // 2), 128)
    return min(half, 1024)              # 2+ tiles, <=1024 rows, mult of 128


def actor_forward(state, packed, n_actions):
    """ActorNetwork forward pass. Returns (action_means, stds) of the Normal
    distribution the PyTorch module would build. Mirrors `.squeeze(0)`."""
    d_in = packed["d_in"]
    hidden = packed["hidden"]
    out_pad = packed["out_pad"]
    out_dim = 2 * n_actions

    B = state.shape[0]
    block_b = _pick_block_b(B)
    grid = (pl.cdiv(B, block_b),)       # partial last tile handled by Pallas

    x = state.astype(jnp.float32)       # no K-pad, no batch-pad round-trip

    flops = 2 * B * (d_in * hidden + 2 * hidden * hidden + hidden * out_pad)
    bytes_accessed = (4 * B * d_in
                      + 2 * (d_in * hidden + 2 * hidden * hidden
                             + hidden * out_pad)
                      + 4 * 4 * hidden
                      + 4 * B * out_pad)

    slab = pl.pallas_call(
        _actor_mlp_kernel,
        out_shape=jax.ShapeDtypeStruct((B, out_pad), jnp.float32),
        grid=grid,
        in_specs=[
            pl.BlockSpec((block_b, d_in), lambda i: (i, 0)),   # x: batch-tiled
            pl.BlockSpec((d_in, hidden), lambda i: (0, 0)),    # weights: resident
            pl.BlockSpec((hidden, hidden), lambda i: (0, 0)),
            pl.BlockSpec((hidden, hidden), lambda i: (0, 0)),
            pl.BlockSpec((hidden, out_pad), lambda i: (0, 0)),
            pl.BlockSpec((4, hidden), lambda i: (0, 0)),       # packed biases
        ],
        out_specs=pl.BlockSpec((block_b, out_pad), lambda i: (i, 0)),
        compiler_params=pltpu.CompilerParams(
            dimension_semantics=("parallel",),    # shards batch over v7x's 2 TCs
            vmem_limit_bytes=32 * 1024 * 1024,
        ),
        cost_estimate=pl.CostEstimate(
            flops=int(flops),
            transcendentals=0,
            bytes_accessed=int(bytes_accessed),
        ),
    )(x, packed["w1"], packed["w2"], packed["w3"], packed["w4"], packed["b"])

    # Head nonlinearities on the tiny real slice only (layout plumbing + 8-lane
    # transcendentals in the wrapper; kernel stays MXU/HBM-limited).
    head = slab[:, :out_dim]
    means = jnp.tanh(head[:, :n_actions])
    stds = jax.nn.softplus(head[:, n_actions:])

    # PyTorch's .squeeze(0) only drops the batch dim when it is 1.
    if B == 1:
        means = jnp.squeeze(means, axis=0)
        stds = jnp.squeeze(stds, axis=0)
    # TODO(synk): torch.distributions.Normal(means, stds) has no kernel
    # equivalent; we return its parameters instead.
    return means, stds


def make_params(key, input_dim, fc1_dims, fc2_dims, n_actions):
    """Raw parameters: W stored [in, out] (transposed vs PyTorch), b stored [out].
    Orthogonal weights per nn.init.orthogonal_; default uniform Linear biases."""
    k = jax.random.split(key, 8)
    dims = [(input_dim, fc1_dims), (fc1_dims, fc2_dims),
            (fc2_dims, fc2_dims), (fc2_dims, 2 * n_actions)]
    params = []
    ortho = jax.nn.initializers.orthogonal()
    for i, (din, dout) in enumerate(dims):
        w = ortho(k[2 * i], (din, dout), jnp.float32)
        bound = 1.0 / jnp.sqrt(din)
        b = jax.random.uniform(k[2 * i + 1], (dout,), jnp.float32, -bound, bound)
        params.append((w, b))
    return params


def _reference_forward(state, params, n_actions):
    h = state.astype(jnp.float32)
    for i, (w, b) in enumerate(params):
        h = h @ w + b
        if i < 3:
            h = jnp.maximum(h, 0.0)
    return jnp.tanh(h[:, :n_actions]), jax.nn.softplus(h[:, n_actions:])


if __name__ == "__main__":
    key = jax.random.PRNGKey(0)
    k_x, k_p = jax.random.split(key)

    # Small shapes consistent with the module: input_dims=(32,), n_actions=4.
    B, D_IN, FC1, FC2, N_ACTIONS = 2, 32, 256, 256, 4

    state = jax.random.normal(k_x, (B, D_IN), jnp.float32)
    params = make_params(k_p, D_IN, FC1, FC2, N_ACTIONS)
    packed = pack_params(params, N_ACTIONS)

    means, stds = actor_forward(state, packed, N_ACTIONS)
    jax.block_until_ready((means, stds))

    # bf16 weights -> compare against the f32 reference with loosened tolerance.
    TOL = 3e-2
    ref_means, ref_stds = _reference_forward(state, params, N_ACTIONS)
    assert means.shape == (B, N_ACTIONS) and stds.shape == (B, N_ACTIONS)
    assert jnp.allclose(means, ref_means, atol=TOL, rtol=TOL)
    assert jnp.allclose(stds, ref_stds, atol=TOL, rtol=TOL)

    # Also check the batch=1 squeeze(0) path, as in the PyTorch module.
    m1, s1 = actor_forward(state[:1], packed, N_ACTIONS)
    jax.block_until_ready((m1, s1))
    assert m1.shape == (N_ACTIONS,) and s1.shape == (N_ACTIONS,)
    assert jnp.allclose(m1, ref_means[0], atol=TOL, rtol=TOL)
    assert jnp.allclose(s1, ref_stds[0], atol=TOL, rtol=TOL)

    print("KERNEL_OK")
</pallas_src>

<mosaic_0001>
module attributes {stable_mosaic.version = 11 : i64} {
  func.func @_actor_mlp_kernel(%arg0: i32, %arg1: memref<2x32xf32, #tpu.memory_space<vmem>>, %arg2: memref<32x256xbf16, #tpu.memory_space<vmem>>, %arg3: memref<256x256xbf16, #tpu.memory_space<vmem>>, %arg4: memref<256x256xbf16, #tpu.memory_space<vmem>>, %arg5: memref<256x128xbf16, #tpu.memory_space<vmem>>, %arg6: memref<4x256xf32, #tpu.memory_space<vmem>>, %arg7: memref<2x128xf32, #tpu.memory_space<vmem>>) attributes {dimension_semantics = [#tpu.dimension_semantics<parallel>], iteration_bounds = array<i64: 1>, scalar_prefetch = 0 : i64, scratch_operands = 0 : i64, tpu.core_type = #tpu.core_type<tc>, window_params = [{transform_indices = @transform_0, window_bounds = array<i64: 2, 32>}, {pipeline_mode = #tpu.pipeline_mode<synchronous>, transform_indices = @transform_1, window_bounds = array<i64: 32, 256>}, {pipeline_mode = #tpu.pipeline_mode<synchronous>, transform_indices = @transform_2, window_bounds = array<i64: 256, 256>}, {pipeline_mode = #tpu.pipeline_mode<synchronous>, transform_indices = @transform_3, window_bounds = array<i64: 256, 256>}, {pipeline_mode = #tpu.pipeline_mode<synchronous>, transform_indices = @transform_4, window_bounds = array<i64: 256, 128>}, {pipeline_mode = #tpu.pipeline_mode<synchronous>, transform_indices = @transform_5, window_bounds = array<i64: 4, 256>}, {transform_indices = @transform_6, window_bounds = array<i64: 2, 128>}]} {
    %c0 = arith.constant 0 : index
    %c0_0 = arith.constant 0 : index
    %0 = vector.load %arg1[%c0, %c0_0] : memref<2x32xf32, #tpu.memory_space<vmem>>, vector<2x32xf32>
    %1 = arith.truncf %0 : vector<2x32xf32> to vector<2x32xbf16>
    %c0_1 = arith.constant 0 : index
    %c0_2 = arith.constant 0 : index
    %2 = vector.load %arg2[%c0_1, %c0_2] : memref<32x256xbf16, #tpu.memory_space<vmem>>, vector<32x256xbf16>
    %cst = arith.constant dense<0.000000e+00> : vector<2x256xf32>
    %3 = tpu.matmul %1, %2, %cst {dimension_numbers = #tpu.dot_dimension_numbers<[1], [0], [0], [1], [0, 0, 1, 1], [], []>} : vector<2x32xbf16>, vector<32x256xbf16>, vector<2x256xf32> -> vector<2x256xf32>
    %c0_3 = arith.constant 0 : index
    %c0_4 = arith.constant 0 : index
    %4 = vector.load %arg6[%c0_3, %c0_4] : memref<4x256xf32, #tpu.memory_space<vmem>>, vector<1x256xf32>
    %5 = vector.broadcast %4 : vector<1x256xf32> to vector<2x256xf32>
    %6 = arith.addf %3, %5 : vector<2x256xf32>
    %cst_5 = arith.constant 0.000000e+00 : f32
    %7 = vector.broadcast %cst_5 : f32 to vector<2x256xf32>
    %8 = arith.maximumf %6, %7 : vector<2x256xf32>
    %9 = arith.truncf %8 : vector<2x256xf32> to vector<2x256xbf16>
    %c0_6 = arith.constant 0 : index
    %c0_7 = arith.constant 0 : index
    %10 = vector.load %arg3[%c0_6, %c0_7] : memref<256x256xbf16, #tpu.memory_space<vmem>>, vector<256x256xbf16>
    %cst_8 = arith.constant dense<0.000000e+00> : vector<2x256xf32>
    %11 = tpu.matmul %9, %10, %cst_8 {dimension_numbers = #tpu.dot_dimension_numbers<[1], [0], [0], [1], [0, 0, 1, 1], [], []>} : vector<2x256xbf16>, vector<256x256xbf16>, vector<2x256xf32> -> vector<2x256xf32>
    %c1 = arith.constant 1 : index
    %c0_9 = arith.constant 0 : index
    %12 = vector.load %arg6[%c1, %c0_9] : memref<4x256xf32, #tpu.memory_space<vmem>>, vector<1x256xf32>
    %13 = vector.broadcast %12 : vector<1x256xf32> to vector<2x256xf32>
    %14 = arith.addf %11, %13 : vector<2x256xf32>
    %cst_10 = arith.constant 0.000000e+00 : f32
    %15 = vector.broadcast %cst_10 : f32 to vector<2x256xf32>
    %16 = arith.maximumf %14, %15 : vector<2x256xf32>
    %17 = arith.truncf %16 : vector<2x256xf32> to vector<2x256xbf16>
    %c0_11 = arith.constant 0 : index
    %c0_12 = arith.constant 0 : index
    %18 = vector.load %arg4[%c0_11, %c0_12] : memref<256x256xbf16, #tpu.memory_space<vmem>>, vector<256x256xbf16>
    %cst_13 = arith.constant dense<0.000000e+00> : vector<2x256xf32>
    %19 = tpu.matmul %17, %18, %cst_13 {dimension_numbers = #tpu.dot_dimension_numbers<[1], [0], [0], [1], [0, 0, 1, 1], [], []>} : vector<2x256xbf16>, vector<256x256xbf16>, vector<2x256xf32> -> vector<2x256xf32>
    %c2 = arith.constant 2 : index
    %c0_14 = arith.constant 0 : index
    %20 = vector.load %arg6[%c2, %c0_14] : memref<4x256xf32, #tpu.memory_space<vmem>>, vector<1x256xf32>
    %21 = vector.broadcast %20 : vector<1x256xf32> to vector<2x256xf32>
    %22 = arith.addf %19, %21 : vector<2x256xf32>
    %cst_15 = arith.constant 0.000000e+00 : f32
    %23 = vector.broadcast %cst_15 : f32 to vector<2x256xf32>
    %24 = arith.maximumf %22, %23 : vector<2x256xf32>
    %25 = arith.truncf %24 : vector<2x256xf32> to vector<2x256xbf16>
    %c0_16 = arith.constant 0 : index
    %c0_17 = arith.constant 0 : index
    %26 = vector.load %arg5[%c0_16, %c0_17] : memref<256x128xbf16, #tpu.memory_space<vmem>>, vector<256x128xbf16>
    %cst_18 = arith.constant dense<0.000000e+00> : vector<2x128xf32>
    %27 = tpu.matmul %25, %26, %cst_18 {dimension_numbers = #tpu.dot_dimension_numbers<[1], [0], [0], [1], [0, 0, 1, 1], [], []>} : vector<2x256xbf16>, vector<256x128xbf16>, vector<2x128xf32> -> vector<2x128xf32>
    %c3 = arith.constant 3 : index
    %c0_19 = arith.constant 0 : index
    %28 = vector.load %arg6[%c3, %c0_19] : memref<4x256xf32, #tpu.memory_space<vmem>>, vector<1x128xf32>
    %29 = vector.broadcast %28 : vector<1x128xf32> to vector<2x128xf32>
    %30 = arith.addf %27, %29 : vector<2x128xf32>
    %c0_20 = arith.constant 0 : index
    %c0_21 = arith.constant 0 : index
    %31 = vector.load %arg7[%c0_20, %c0_21] : memref<2x128xf32, #tpu.memory_space<vmem>>, vector<2x128xf32>
    tpu.vector_store %arg7[%c0_20, %c0_21], %30 {strides = array<i32>} : memref<2x128xf32, #tpu.memory_space<vmem>>, vector<2x128xf32>,
    return
  }
  func.func @transform_0(%arg0: i32) -> (i32, i32) {
    %c0_i32 = arith.constant 0 : i32
    %c0_i32_0 = arith.constant 0 : i32
    return %arg0, %c0_i32 : i32, i32
  }
  func.func @transform_1(%arg0: i32) -> (i32, i32) {
    %c0_i32 = arith.constant 0 : i32
    %c0_i32_0 = arith.constant 0 : i32
    %c0_i32_1 = arith.constant 0 : i32
    return %c0_i32, %c0_i32_0 : i32, i32
  }
  func.func @transform_2(%arg0: i32) -> (i32, i32) {
    %c0_i32 = arith.constant 0 : i32
    %c0_i32_0 = arith.constant 0 : i32
    %c0_i32_1 = arith.constant 0 : i32
    return %c0_i32, %c0_i32_0 : i32, i32
  }
  func.func @transform_3(%arg0: i32) -> (i32, i32) {
    %c0_i32 = arith.constant 0 : i32
    %c0_i32_0 = arith.constant 0 : i32
    %c0_i32_1 = arith.constant 0 : i32
    return %c0_i32, %c0_i32_0 : i32, i32
  }
  func.func @transform_4(%arg0: i32) -> (i32, i32) {
    %c0_i32 = arith.constant 0 : i32
    %c0_i32_0 = arith.constant 0 : i32
    %c0_i32_1 = arith.constant 0 : i32
    return %c0_i32, %c0_i32_0 : i32, i32
  }
  func.func @transform_5(%arg0: i32) -> (i32, i32) {
    %c0_i32 = arith.constant 0 : i32
    %c0_i32_0 = arith.constant 0 : i32
    %c0_i32_1 = arith.constant 0 : i32
    return %c0_i32, %c0_i32_0 : i32, i32
  }
  func.func @transform_6(%arg0: i32) -> (i32, i32) {
    %c0_i32 = arith.constant 0 : i32
    %c0_i32_0 = arith.constant 0 : i32
    return %arg0, %c0_i32 : i32, i32
  }
}

</mosaic_0001>

<bundles_post_ra>
// kernel: tpu_custom_call.1
= control target key start
LH: loop header
LB: loop body
LE: loop exit
PB: predicated region body
PF: predicated region fallthrough
CT: control target
= control target key end

     0   :  { %11 = vsyncpa [#allocation3], 0  ;;  %s1397_s0 = inlined_call_operand.hbm [shape: f32[2,32], index: 0, kind: input, shape index: {}]   ;;  %s1398_s1 = inlined_call_operand.hbm [shape: bf16[32,256], index: 1, kind: input, shape index: {}]   ;;  %s1399_s2 = inlined_call_operand.hbm [shape: bf16[256,256], index: 2, kind: input, shape index: {}]   ;;  %s1400_s3 = inlined_call_operand.hbm [shape: bf16[256,256], index: 3, kind: input, shape index: {}]   ;;  %s1401_s4 = inlined_call_operand.hbm [shape: bf16[256,128], index: 4, kind: input, shape index: {}]   ;;  %s1402_s5 = inlined_call_operand.vmem [shape: f32[4,256], index: 5, kind: input, shape index: {}]   ;;  %s1403_s6 = inlined_call_operand.hbm [shape: f32[2,128], index: 6, kind: output, shape index: {}]  }
   0x1   :  { %12 = vsyncpa [#allocation6], 0 }
   0x2   :  { %13 = vsyncpa [#allocation9], 0 }
   0x3   :  { %14 = vsyncpa [#allocation4], 0  ;;  %s1248_s21 = smov [#allocation5]   ;;  %s1108_s25 = scalar_lea.hbm %s1398_s1, 512 }
   0x4   :  { %s30_s22 = sshll.u32 %s1248_s21, 4  ;;  %p1109_p0 = scmp.ne.s32.totalorder %s1398_s1, %s1108_s25  ;;  %s31_s22 = int_to_ptr.vmem [resolvable:$true] %s30_s22 }
   0x5   :  { %p1112_p1 = scmp.lt.u32.totalorder %s1108_s25, %s1398_s1 }
   0x7   :  { %p1114_p2 = pnand %p1112_p1, %p1109_p0 }
   0x9   :  { %1117 = shalt.err (!%p1114_p2)
}
   0xa   :  { %s1118_s30 = scalar_lea.vmem %s31_s22, 512  ;;  %p1123_p4 = scmp.lt.s32.totalorder %s31_s22, %s31_s22 }
   0xb   :  { %p1119_p3 = scmp.ne.s32.totalorder %s31_s22, %s1118_s30  ;;  %p1124_p5 = scmp.lt.s32.totalorder %s1118_s30, %s1118_s30 }
   0xd   :  { %p1125_p6 = por %p1124_p5, %p1123_p4 }
   0xf   :  { %p1126_p7 = pnand %p1125_p6, %p1119_p3 }
  0x11   :  { %1129 = shalt.err (!%p1126_p7)
}
  0x12   :  { %s1249_s7 = smov 128   ;;  %s1250_s8 = smov 8  }
  0x13   :  { %36 = dma.hbm_to_vmem [thread:$0]  %s1398_s1, 512, %s31_s22, [#allocation6], %s1249_s7, %s1249_s7, %s1250_s8  }
  0x14   :  { %s1251_s11 = smov [#allocation8]   ;;  %s1252_s13 = smov [#allocation2]  }
  0x15   :  { %s54_s12 = sshll.u32 %s1251_s11, 4  ;;  %s21_s14 = sshll.u32 %s1252_s13, 4  ;;  %s55_s12 = int_to_ptr.vmem [resolvable:$true] %s54_s12  ;;  %s22_s14 = int_to_ptr.vmem [resolvable:$true] %s21_s14 }
  0x16   :  { %s1130_s17 = scalar_lea.hbm %s1400_s3, 4096 }
  0x17   :  { %p1131_p8 = scmp.ne.s32.totalorder %s1400_s3, %s1130_s17  ;;  %p1134_p9 = scmp.lt.u32.totalorder %s1130_s17, %s1400_s3 }
  0x19   :  { %p1136_p10 = pnand %p1134_p9, %p1131_p8 }
  0x1b   :  { %1139 = shalt.err (!%p1136_p10)
}
  0x1c   :  { %s1140_s1 = scalar_lea.vmem %s55_s12, 4096  ;;  %p1145_p12 = scmp.lt.s32.totalorder %s55_s12, %s55_s12 }
  0x1d   :  { %p1141_p11 = scmp.ne.s32.totalorder %s55_s12, %s1140_s1  ;;  %p1146_p13 = scmp.lt.s32.totalorder %s1140_s1, %s1140_s1 }
  0x1f   :  { %p1147_p0 = por %p1146_p13, %p1145_p12 }
  0x21   :  { %p1148_p1 = pnand %p1147_p0, %p1141_p11 }
  0x23   :  { %1151 = shalt.err (!%p1148_p1)
}
  0x24   :  { %60 = dma.hbm_to_vmem [thread:$0]  %s1400_s3, 4096, %s55_s12, [#allocation9], %s1249_s7, %s1249_s7, %s1250_s8  }
  0x25   :  { %s1152_s26 = scalar_lea.hbm %s1397_s0, 32 }
  0x26   :  { %p1153_p2 = scmp.ne.s32.totalorder %s1397_s0, %s1152_s26  ;;  %p1156_p3 = scmp.lt.u32.totalorder %s1152_s26, %s1397_s0 }
  0x28   :  { %p1158_p4 = pnand %p1156_p3, %p1153_p2 }
  0x2a   :  { %1161 = shalt.err (!%p1158_p4)
}
  0x2b   :  { %s1162_s9 = scalar_lea.vmem %s22_s14, 32  ;;  %p1167_p6 = scmp.lt.s32.totalorder %s22_s14, %s22_s14 }
  0x2c   :  { %p1163_p5 = scmp.ne.s32.totalorder %s22_s14, %s1162_s9  ;;  %p1168_p7 = scmp.lt.s32.totalorder %s1162_s9, %s1162_s9 }
  0x2e   :  { %p1169_p8 = por %p1168_p7, %p1167_p6 }
  0x30   :  { %p1170_p9 = pnand %p1169_p8, %p1163_p5 }
  0x32   :  { %1173 = shalt.err (!%p1170_p9)
}
  0x33   :  { %24 = dma.hbm_to_vmem [thread:$0]  %s1397_s0, 32, %s22_s14, [#allocation3]  }
  0x34   :  { %s1253_s11 = smov [#allocation7]   ;;  %s1254_s13 = smov [#allocation10]  }
  0x35   :  { %s42_s12 = sshll.u32 %s1253_s11, 4  ;;  %s66_s15 = sshll.u32 %s1254_s13, 4  ;;  %s43_s12 = int_to_ptr.vmem [resolvable:$true] %s42_s12  ;;  %s67_s15 = int_to_ptr.vmem [resolvable:$true] %s66_s15 }
  0x36   :  { %s1174_s18 = scalar_lea.hbm %s1399_s2, 4096 }
  0x37   :  { %p1175_p10 = scmp.ne.s32.totalorder %s1399_s2, %s1174_s18  ;;  %p1178_p11 = scmp.lt.u32.totalorder %s1174_s18, %s1399_s2 }
  0x39   :  { %p1180_p12 = pnand %p1178_p11, %p1175_p10 }
  0x3b   :  { %1183 = shalt.err (!%p1180_p12)
}
  0x3c   :  { %s1184_s0 = scalar_lea.vmem %s43_s12, 4096  ;;  %p1189_p0 = scmp.lt.s32.totalorder %s43_s12, %s43_s12 }
  0x3d   :  { %p1185_p13 = scmp.ne.s32.totalorder %s43_s12, %s1184_s0  ;;  %p1190_p1 = scmp.lt.s32.totalorder %s1184_s0, %s1184_s0 }
  0x3f   :  { %p1191_p2 = por %p1190_p1, %p1189_p0 }
  0x41   :  { %p1192_p3 = pnand %p1191_p2, %p1185_p13 }
  0x43   :  { %1195 = shalt.err (!%p1192_p3)
}
  0x44   :  { %48 = dma.hbm_to_vmem [thread:$0]  %s1399_s2, 4096, %s43_s12, [#allocation6], %s1249_s7, %s1249_s7, %s1250_s8  }
  0x45   :  { %s1196_s25 = scalar_lea.hbm %s1401_s4, 2048 }
  0x46   :  { %p1197_p4 = scmp.ne.s32.totalorder %s1401_s4, %s1196_s25  ;;  %p1200_p5 = scmp.lt.u32.totalorder %s1196_s25, %s1401_s4 }
  0x48   :  { %p1202_p6 = pnand %p1200_p5, %p1197_p4 }
  0x4a   :  { %1205 = shalt.err (!%p1202_p6)
}
  0x4b   :  { %s1206_s30 = scalar_lea.vmem %s67_s15, 2048  ;;  %p1211_p8 = scmp.lt.s32.totalorder %s67_s15, %s67_s15 }
  0x4c   :  { %p1207_p7 = scmp.ne.s32.totalorder %s67_s15, %s1206_s30  ;;  %p1212_p9 = scmp.lt.s32.totalorder %s1206_s30, %s1206_s30 }
  0x4e   :  { %p1213_p10 = por %p1212_p9, %p1211_p8 }
  0x50   :  { %p1214_p11 = pnand %p1213_p10, %p1207_p7 }
  0x52   :  { %1217 = shalt.err (!%p1214_p11)
}
  0x53   :  { %s1255_s2 = smov 64   ;;  %s1256_s7 = smov 4  }
  0x54   :  { %72 = dma.hbm_to_vmem [thread:$0]  %s1401_s4, 2048, %s67_s15, [#allocation9], %s1255_s2, %s1255_s2, %s1256_s7  }
  0x55   :  { %1240 = dma.done.wait [#allocation3], 32  }
  0x56   :  { %1241 = vsyncadd [#allocation3], 4294967264 }
  0x57   :  { %1242 = dma.done.wait [#allocation6], 4608  }
  0x58   :  { %1243 = vsyncadd [#allocation6], 4294962688 }
  0x59   :  { %1244 = dma.done.wait [#allocation9], 6144  }
  0x5a   :  { %1245 = vsyncadd [#allocation9], 4294961152  ;;  %v1257_v0 = vmov 0   ;;  %v990_v1 = vld [vmem:[#allocation5 + $0x4] ss:$8 sps:$4 sm:$0xff]   ;;  %vm129_vm0 = vcmask 261120  }
  0x5b   :  { %165 = vmatprep.mubr.bf16.mxu0 %v1257_v0  ;;  %v992_v2 = vld [vmem:[#allocation5] ss:$8 sps:$4 sm:$0xff]   ;;  %133 = vmatprep.subr.bf16.mxu0 %v990_v1  ;;  %v993_v3 = vld [vmem:[#allocation5 + $0x14] ss:$8 sps:$4 sm:$0xff]   ;;  %v995_v4 = vld [vmem:[#allocation5 + $0x10] ss:$8 sps:$4 sm:$0xff]  }
  0x5c   :  { %v91_v5 = vld [vmem:[#allocation2] sm:$0x3]  ;;  %134 = vmatpush1.bf16.msra.mxu0 %v992_v2  ;;  %v996_v6 = vld [vmem:[#allocation7 + $0x4] ss:$8 sps:$4 sm:$0xff]   ;;  %v998_v7 = vld [vmem:[#allocation7] ss:$8 sps:$4 sm:$0xff]  }
  0x5d   :  { %135 = vmatprep.subr.bf16.mxu0 %v993_v3  ;;  %383 = vmatprep.subr.bf16.mxu1 %v996_v6  ;;  %v999_v8 = vld [vmem:[#allocation7 + $0x14] ss:$8 sps:$4 sm:$0xff]   ;;  %v92_v9 = vpack.c.bf16 %v91_v5, %v91_v5  ;;  %v1001_v10 = vld [vmem:[#allocation7 + $0x10] ss:$8 sps:$4 sm:$0xff]   ;;  %v1002_v11 = vld [vmem:[#allocation7 + $0x24] ss:$8 sps:$4 sm:$0xff]   ;;  %v99_v3 = vlaneseq }
  0x5e   :  { %384 = vmatpush1.bf16.msra.mxu1 %v998_v7  ;;  %v1004_v12 = vld [vmem:[#allocation7 + $0x20] ss:$8 sps:$4 sm:$0xff]   ;;  %v1005_v13 = vld [vmem:[#allocation7 + $0x34] ss:$8 sps:$4 sm:$0xff]   ;;  %v1007_v14 = vld [vmem:[#allocation7 + $0x30] ss:$8 sps:$4 sm:$0xff]  }
  0x5f   :  { %385 = vmatprep.subr.bf16.mxu1 %v999_v8  ;;  %v1008_v15 = vld [vmem:[#allocation7 + $0x44] ss:$8 sps:$4 sm:$0xff]   ;;  %v1010_v16 = vld [vmem:[#allocation7 + $0x40] ss:$8 sps:$4 sm:$0xff]   ;;  %v1011_v17 = vld [vmem:[#allocation7 + $0x54] ss:$8 sps:$4 sm:$0xff]  }
  0x60   :  { %136 = vmatpush1.bf16.msra.mxu0 %v995_v4  ;;  %v1013_v18 = vld [vmem:[#allocation7 + $0x50] ss:$8 sps:$4 sm:$0xff]   ;;  %v1014_v19 = vld [vmem:[#allocation7 + $0x64] ss:$8 sps:$4 sm:$0xff]   ;;  %v1016_v20 = vld [vmem:[#allocation7 + $0x60] ss:$8 sps:$4 sm:$0xff]  }
  0x61   :  { %v1017_v21 = vld [vmem:[#allocation7 + $0x74] ss:$8 sps:$4 sm:$0xff]   ;;  %v1019_v22 = vld [vmem:[#allocation7 + $0x70] ss:$8 sps:$4 sm:$0xff]   ;;  %v1020_v23 = vld [vmem:[#allocation7 + $0x84] ss:$8 sps:$4 sm:$0xff]  }
  0x62   :  { %386 = vmatpush1.bf16.msra.mxu1 %v1001_v10  ;;  %v1022_v24 = vld [vmem:[#allocation7 + $0x80] ss:$8 sps:$4 sm:$0xff]   ;;  %v1023_v25 = vld [vmem:[#allocation7 + $0x94] ss:$8 sps:$4 sm:$0xff]   ;;  %v1025_v26 = vld [vmem:[#allocation7 + $0x90] ss:$8 sps:$4 sm:$0xff]  }
  0x63   :  { %873 = vmatmul.mubr.msk.bf16.vlgmr.msra.gmra.mrb[0].mxu0 %vm129_vm0, %v92_v9  ;;  %387 = vmatprep.subr.bf16.mxu1 %v1002_v11  ;;  %v1026_v27 = vld [vmem:[#allocation7 + $0xa4] ss:$8 sps:$4 sm:$0xff]   ;;  %v1028_v28 = vld [vmem:[#allocation7 + $0xa0] ss:$8 sps:$4 sm:$0xff]   ;;  %v1029_v29 = vld [vmem:[#allocation7 + $0xb4] ss:$8 sps:$4 sm:$0xff]  }
  0x64   :  { %v1031_v30 = vld [vmem:[#allocation7 + $0xb0] ss:$8 sps:$4 sm:$0xff]   ;;  %v1032_v31 = vld [vmem:[#allocation7 + $0xc4] ss:$8 sps:$4 sm:$0xff]   ;;  %v1034_v32 = vld [vmem:[#allocation7 + $0xc0] ss:$8 sps:$4 sm:$0xff]  }
  0x65   :  { %v1035_v33 = vld [vmem:[#allocation7 + $0xd4] ss:$8 sps:$4 sm:$0xff]   ;;  %v1037_v34 = vld [vmem:[#allocation7 + $0xd0] ss:$8 sps:$4 sm:$0xff]   ;;  %v1038_v35 = vld [vmem:[#allocation7 + $0xe4] ss:$8 sps:$4 sm:$0xff]  }
  0x66   :  { %388 = vmatpush1.bf16.msra.mxu1 %v1004_v12  ;;  %v1040_v36 = vld [vmem:[#allocation7 + $0xe0] ss:$8 sps:$4 sm:$0xff]   ;;  %v1041_v37 = vld [vmem:[#allocation7 + $0xf4] ss:$8 sps:$4 sm:$0xff]   ;;  %v1043_v38 = vld [vmem:[#allocation7 + $0xf0] ss:$8 sps:$4 sm:$0xff]  }
  0x67   :  { %389 = vmatprep.subr.bf16.mxu1 %v1005_v13  ;;  %v1044_v39 = vld [vmem:[#allocation8] ss:$8 sps:$4 sm:$0xff]   ;;  %v1046_v40 = vld [vmem:[#allocation8 + $0x4] ss:$8 sps:$4 sm:$0xff]   ;;  %v1049_v41 = vld [vmem:[#allocation8 + $0x14] ss:$8 sps:$4 sm:$0xff]  }
  0x68   :  { %633 = vmatprep.subr.bf16.mxu0 %v1046_v40  ;;  %v1047_v42 = vld [vmem:[#allocation8 + $0x10] ss:$8 sps:$4 sm:$0xff]   ;;  %v1052_v43 = vld [vmem:[#allocation8 + $0x24] ss:$8 sps:$4 sm:$0xff]   ;;  %v1050_v44 = vld [vmem:[#allocation8 + $0x20] ss:$8 sps:$4 sm:$0xff]  }
  0x69   :  { %634 = vmatpush1.bf16.msra.mxu0 %v1044_v39  ;;  %v1055_v45 = vld [vmem:[#allocation8 + $0x34] ss:$8 sps:$4 sm:$0xff]   ;;  %v1053_v46 = vld [vmem:[#allocation8 + $0x30] ss:$8 sps:$4 sm:$0xff]   ;;  %v1058_v47 = vld [vmem:[#allocation8 + $0x44] ss:$8 sps:$4 sm:$0xff]  }
  0x6a   :  { %390 = vmatpush1.bf16.msra.mxu1 %v1007_v14  ;;  %635 = vmatprep.subr.bf16.mxu0 %v1049_v41  ;;  %v1056_v48 = vld [vmem:[#allocation8 + $0x40] ss:$8 sps:$4 sm:$0xff]   ;;  %v1061_v49 = vld [vmem:[#allocation8 + $0x54] ss:$8 sps:$4 sm:$0xff]   ;;  %v1059_v50 = vld [vmem:[#allocation8 + $0x50] ss:$8 sps:$4 sm:$0xff]  }
  0x6b   :  { %391 = vmatprep.subr.bf16.mxu1 %v1008_v15  ;;  %v1064_v51 = vld [vmem:[#allocation8 + $0x64] ss:$8 sps:$4 sm:$0xff]   ;;  %v1062_v52 = vld [vmem:[#allocation8 + $0x60] ss:$8 sps:$4 sm:$0xff]   ;;  %v1067_v53 = vld [vmem:[#allocation8 + $0x74] ss:$8 sps:$4 sm:$0xff]  }
  0x6c   :  { %v1065_v54 = vld [vmem:[#allocation8 + $0x70] ss:$8 sps:$4 sm:$0xff]   ;;  %v1070_v55 = vld [vmem:[#allocation8 + $0x84] ss:$8 sps:$4 sm:$0xff]   ;;  %v1068_v56 = vld [vmem:[#allocation8 + $0x80] ss:$8 sps:$4 sm:$0xff]  }
  0x6d   :  { %636 = vmatpush1.bf16.msra.mxu0 %v1047_v42  ;;  %v1073_v57 = vld [vmem:[#allocation8 + $0x94] ss:$8 sps:$4 sm:$0xff]   ;;  %v1071_v58 = vld [vmem:[#allocation8 + $0x90] ss:$8 sps:$4 sm:$0xff]   ;;  %v1076_v59 = vld [vmem:[#allocation8 + $0xa4] ss:$8 sps:$4 sm:$0xff]  }
  0x6e   :  { %392 = vmatpush1.bf16.msra.mxu1 %v1010_v16  ;;  %637 = vmatprep.subr.bf16.mxu0 %v1052_v43  ;;  %v1074_v60 = vld [vmem:[#allocation8 + $0xa0] ss:$8 sps:$4 sm:$0xff]   ;;  %v1079_v61 = vld [vmem:[#allocation8 + $0xb4] ss:$8 sps:$4 sm:$0xff]   ;;  %v1077_v62 = vld [vmem:[#allocation8 + $0xb0] ss:$8 sps:$4 sm:$0xff]  }
  0x6f   :  { %393 = vmatprep.subr.bf16.mxu1 %v1011_v17  ;;  %v1082_v63 = vld [vmem:[#allocation8 + $0xc4] ss:$8 sps:$4 sm:$0xff]   ;;  %v1080_v0 = vld [vmem:[#allocation8 + $0xc0] ss:$8 sps:$4 sm:$0xff]   ;;  %v1085_v1 = vld [vmem:[#allocation8 + $0xd4] ss:$8 sps:$4 sm:$0xff]  }
  0x70   :  { %v1083_v2 = vld [vmem:[#allocation8 + $0xd0] ss:$8 sps:$4 sm:$0xff]   ;;  %v100_v4 = vshrl.u32 %v99_v3, 7  ;;  %s1258_s17 = smov [#allocation11]  }
  0x71   :  { %638 = vmatpush1.bf16.msra.mxu0 %v1050_v44  ;;  %v97_v6 = vld [vmem:[%s1402_s5] ss:$4 sm:$0x3]  ;;  %v940_v3 = vld [vmem:[%s1402_s5 + $0x3] ss:$0 sm:$0xff]  ;;  %s858_s18 = sshll.u32 %s1258_s17, 4  ;;  %s859_s18 = int_to_ptr.vmem [resolvable:$true] %s858_s18 }
  0x72   :  { %394 = vmatpush1.bf16.msra.mxu1 %v1013_v18  ;;  %639 = vmatprep.subr.bf16.mxu0 %v1055_v45  ;;  %v1363_v5 = vsub.s32 0, %v100_v4  ;;  %v1368_v7 = vsub.s32 1, %v100_v4  ;;  %s1218_s19 = scalar_lea.vmem %s859_s18, 32  ;;  %p1223_p13 = scmp.lt.s32.totalorder %s859_s18, %s859_s18 }
  0x73   :  { %395 = vmatprep.subr.bf16.mxu1 %v1014_v19  ;;  %p1219_p12 = scmp.ne.s32.totalorder %s859_s18, %s1218_s19  ;;  %p1224_p0 = scmp.lt.s32.totalorder %s1218_s19, %s1218_s19 }
  0x74   :  { %v102_v8 = vrot.slane %v97_v6, %v1363_v5  ;;  %v106_v9 = vrot.slane %v97_v6, %v1368_v7 }
  0x75   :  { %640 = vmatpush1.bf16.msra.mxu0 %v1053_v46  ;;  %p1225_p1 = por %p1224_p0, %p1223_p13 }
  0x76   :  { %396 = vmatpush1.bf16.msra.mxu1 %v1016_v20  ;;  %641 = vmatprep.subr.bf16.mxu0 %v1058_v47  ;;  %v1088_v20 = vld [vmem:[#allocation8 + $0xe4] ss:$8 sps:$4 sm:$0xff]  }
  0x77   :  { %397 = vmatprep.subr.bf16.mxu1 %v1017_v21  ;;  %v1086_v21 = vld [vmem:[#allocation8 + $0xe0] ss:$8 sps:$4 sm:$0xff]   ;;  %p1226_p2 = pnand %p1225_p1, %p1219_p12 }
  0x79   :  { %642 = vmatpush1.bf16.msra.mxu0 %v1056_v48 }
  0x7a   :  { %398 = vmatpush1.bf16.msra.mxu1 %v1019_v22  ;;  %643 = vmatprep.subr.bf16.mxu0 %v1061_v49  ;;  %v1091_v22 = vld [vmem:[#allocation8 + $0xf4] ss:$8 sps:$4 sm:$0xff]  }
  0x7b   :  { %399 = vmatprep.subr.bf16.mxu1 %v1020_v23  ;;  %v1089_v23 = vld [vmem:[#allocation8 + $0xf0] ss:$8 sps:$4 sm:$0xff]  }
  0x7c   :  { %v1104_v49 = vld [vmem:[#allocation10 + $0x70] sm:$0xff]  }
  0x7d   :  { %644 = vmatpush1.bf16.msra.mxu0 %v1059_v50  ;;  %v1105_v50 = vld [vmem:[#allocation10 + $0x30] sm:$0xff]  }
  0x7e   :  { %400 = vmatpush1.bf16.msra.mxu1 %v1022_v24  ;;  %645 = vmatprep.subr.bf16.mxu0 %v1064_v51  ;;  %v1092_v24 = vld [vmem:[#allocation10 + $0x40] sm:$0xff]   ;;  %v1106_v51 = vld [vmem:[#allocation10 + $0x78] sm:$0xff]  }
  0x7f   :  { %401 = vmatprep.subr.bf16.mxu1 %v1023_v25  ;;  %v1093_v25 = vld [vmem:[#allocation10] sm:$0xff]  }
  0x81   :  { %646 = vmatpush1.bf16.msra.mxu0 %v1062_v52  ;;  %v1107_v52 = vld [vmem:[#allocation10 + $0x38] sm:$0xff]  }
  0x82   :  { %402 = vmatpush1.bf16.msra.mxu1 %v1025_v26  ;;  %647 = vmatprep.subr.bf16.mxu0 %v1067_v53  ;;  %v1094_v26 = vld [vmem:[#allocation10 + $0x48] sm:$0xff]   ;;  %v907_v53 = vld [vmem:[%s1402_s5 + $0x2] ss:$4 sm:$0x3] }
  0x83   :  { %403 = vmatprep.subr.bf16.mxu1 %v1026_v27  ;;  %v1095_v27 = vld [vmem:[#allocation10 + $0x8] sm:$0xff]  }
  0x85   :  { %648 = vmatpush1.bf16.msra.mxu0 %v1065_v54  ;;  %v466_v54 = vrot.slane %v907_v53, %v1363_v5 }
  0x86   :  { %404 = vmatpush1.bf16.msra.mxu1 %v1028_v28  ;;  %649 = vmatprep.subr.bf16.mxu0 %v1070_v55  ;;  %v1096_v28 = vld [vmem:[#allocation10 + $0x50] sm:$0xff]   ;;  %v470_v55 = vrot.slane %v907_v53, %v1368_v7 }
  0x87   :  { %405 = vmatprep.subr.bf16.mxu1 %v1029_v29  ;;  %v1097_v29 = vld [vmem:[#allocation10 + $0x10] sm:$0xff]  }
  0x89   :  { %650 = vmatpush1.bf16.msra.mxu0 %v1068_v56 }
  0x8a   :  { %406 = vmatpush1.bf16.msra.mxu1 %v1031_v30  ;;  %651 = vmatprep.subr.bf16.mxu0 %v1073_v57  ;;  %v1098_v30 = vld [vmem:[#allocation10 + $0x58] sm:$0xff]  }
  0x8b   :  { %407 = vmatprep.subr.bf16.mxu1 %v1032_v31  ;;  %v1099_v31 = vld [vmem:[#allocation10 + $0x18] sm:$0xff]  }
  0x8d   :  { %652 = vmatpush1.bf16.msra.mxu0 %v1071_v58 }
  0x8e   :  { %408 = vmatpush1.bf16.msra.mxu1 %v1034_v32  ;;  %653 = vmatprep.subr.bf16.mxu0 %v1076_v59  ;;  %v1100_v32 = vld [vmem:[#allocation10 + $0x60] sm:$0xff]  }
  0x8f   :  { %409 = vmatprep.subr.bf16.mxu1 %v1035_v33  ;;  %v1101_v33 = vld [vmem:[#allocation10 + $0x20] sm:$0xff]  }
  0x91   :  { %654 = vmatpush1.bf16.msra.mxu0 %v1074_v60 }
  0x92   :  { %410 = vmatpush1.bf16.msra.mxu1 %v1037_v34  ;;  %655 = vmatprep.subr.bf16.mxu0 %v1079_v61  ;;  %v1102_v34 = vld [vmem:[#allocation10 + $0x68] sm:$0xff]  }
  0x93   :  { %411 = vmatprep.subr.bf16.mxu1 %v1038_v35  ;;  %v1103_v35 = vld [vmem:[#allocation10 + $0x28] sm:$0xff]  }
  0x95   :  { %656 = vmatpush1.bf16.msra.mxu0 %v1077_v62 }
  0x96   :  { %412 = vmatpush1.bf16.msra.mxu1 %v1040_v36  ;;  %657 = vmatprep.subr.bf16.mxu0 %v1082_v63  ;;  %v874_v36 = vld [vmem:[%s1402_s5 + $0x1] ss:$4 sm:$0x3] }
  0x97   :  { %413 = vmatprep.subr.bf16.mxu1 %v1041_v37  ;;  %v216_v37 = vrot.slane %v874_v36, %v1363_v5 }
  0x99   :  { %658 = vmatpush1.bf16.msra.mxu0 %v1080_v0 }
  0x9a   :  { %414 = vmatpush1.bf16.msra.mxu1 %v1043_v38  ;;  %659 = vmatprep.subr.bf16.mxu0 %v1085_v1  ;;  %v220_v38 = vrot.slane %v874_v36, %v1368_v7 }
  0x9b   :  { %957 = vmatprep.subr.bf16.mxu1 %v1092_v24 }
  0x9d   :  { %660 = vmatpush1.bf16.msra.mxu0 %v1083_v2 }
  0x9e   :  { %661 = vmatprep.subr.bf16.mxu0 %v1088_v20 }
  0xa1   :  { %662 = vmatpush1.bf16.msra.mxu0 %v1086_v21 }
  0xa2   :  { %663 = vmatprep.subr.bf16.mxu0 %v1091_v22 }
  0xa5   :  { %664 = vmatpush1.bf16.msra.mxu0 %v1089_v23 }
 0x136   :  { %v167_v10 = vpop.f32.mrb[0].mxu0 }
 0x137   :  { %v168_v11 = vadd.f32 %v167_v10, %v102_v8  ;;  %v169_v12 = vpop.f32.mrb[1].mxu0 }
 0x138   :  { %v170_v13 = vadd.f32 %v169_v12, %v106_v9  ;;  %v171_v14 = vpop.f32.mrb[2].mxu0 }
 0x139   :  { %v174_v15 = vmax.f32 %v168_v11, 0.0  ;;  %v172_v16 = vpop.f32.mrb[3].mxu0 }
 0x13a   :  { %v175_v17 = vmax.f32 %v170_v13, 0.0 }
 0x13b   :  { %v176_v19 = vpack.c.bf16 %v174_v15, %v174_v15 }
 0x13c   :  { %v177_v18 = vpack.c.bf16 %v175_v17, %v175_v17 }
 0x13e   :  { %415 = vmatprep.mubr.bf16.mxu1 %v177_v18 }
 0x13f   :  { %416 = vmatmul.mubr.bf16.vlgmr.msra.gmra.mrb[0].mxu1 %v176_v19 }
 0x140   :  { %958 = vmatpush3.bf16.msra.mxu1 %v1093_v25 }
 0x141   :  { %959 = vmatprep.subr.bf16.mxu1 %v1094_v26 }
 0x144   :  { %960 = vmatpush3.bf16.msra.mxu1 %v1095_v27 }
 0x145   :  { %961 = vmatprep.subr.bf16.mxu1 %v1096_v28 }
 0x148   :  { %962 = vmatpush3.bf16.msra.mxu1 %v1097_v29 }
 0x149   :  { %963 = vmatprep.subr.bf16.mxu1 %v1098_v30 }
 0x14c   :  { %964 = vmatpush3.bf16.msra.mxu1 %v1099_v31 }
 0x14d   :  { %965 = vmatprep.subr.bf16.mxu1 %v1100_v32 }
 0x150   :  { %966 = vmatpush3.bf16.msra.mxu1 %v1101_v33 }
 0x151   :  { %967 = vmatprep.subr.bf16.mxu1 %v1102_v34 }
 0x154   :  { %968 = vmatpush3.bf16.msra.mxu1 %v1103_v35 }
 0x155   :  { %969 = vmatprep.subr.bf16.mxu1 %v1104_v49 }
 0x158   :  { %970 = vmatpush3.bf16.msra.mxu1 %v1105_v50 }
 0x159   :  { %971 = vmatprep.subr.bf16.mxu1 %v1106_v51 }
 0x15c   :  { %972 = vmatpush3.bf16.msra.mxu1 %v1107_v52 }
 0x212   :  { %v417_v39 = vpop.f32.mrb[0].mxu1 }
 0x213   :  { %v418_v40 = vadd.f32 %v417_v39, %v216_v37  ;;  %v419_v41 = vpop.f32.mrb[1].mxu1 }
 0x214   :  { %v420_v42 = vadd.f32 %v419_v41, %v220_v38  ;;  %v421_v43 = vpop.f32.mrb[2].mxu1 }
 0x215   :  { %v424_v44 = vmax.f32 %v418_v40, 0.0  ;;  %v422_v45 = vpop.f32.mrb[3].mxu1 }
 0x216   :  { %v425_v46 = vmax.f32 %v420_v42, 0.0 }
 0x217   :  { %v426_v48 = vpack.c.bf16 %v424_v44, %v424_v44 }
 0x218   :  { %v427_v47 = vpack.c.bf16 %v425_v46, %v425_v46 }
 0x21a   :  { %665 = vmatprep.mubr.bf16.mxu0 %v427_v47 }
 0x21b   :  { %666 = vmatmul.mubr.bf16.vlgmr.msra.gmra.mrb[4].mxu0 %v426_v48 }
 0x2ee   :  { %v667_v56 = vpop.f32.mrb[4].mxu0 }
 0x2ef   :  { %v668_v57 = vadd.f32 %v667_v56, %v466_v54  ;;  %v669_v58 = vpop.f32.mrb[5].mxu0 }
 0x2f0   :  { %v670_v59 = vadd.f32 %v669_v58, %v470_v55  ;;  %v671_v60 = vpop.f32.mrb[6].mxu0 }
 0x2f1   :  { %v674_v61 = vmax.f32 %v668_v57, 0.0  ;;  %v672_v62 = vpop.f32.mrb[7].mxu0 }
 0x2f2   :  { %v675_v63 = vmax.f32 %v670_v59, 0.0 }
 0x2f3   :  { %v676_v1 = vpack.c.bf16 %v674_v61, %v674_v61 }
 0x2f4   :  { %v677_v0 = vpack.c.bf16 %v675_v63, %v675_v63 }
 0x2f6   :  { %843 = vmatprep.mubr.bf16.mxu1 %v677_v0 }
 0x2f7   :  { %844 = vmatmul.mubr.bf16.vlgmr.msra.gmra.mrb[4].mxu1 %v676_v1 }
 0x3ca   :  { %v973_v2 = vpop.f32.mrb[4].mxu1 }
 0x3cb   :  { %v974_v4 = vpop.f32.mrb[5].mxu1 }
 0x3cc   :  { %v975_v5 = vadd.f32 %v974_v4, %v973_v2  ;;  %v976_v6 = vpop.f32.mrb[6].mxu1 }
 0x3cd   :  { %v977_v7 = vpop.f32.mrb[7].mxu1 }
 0x3ce   :  { %v846_v8 = vadd.f32 %v975_v5, %v940_v3 }
 0x3d0   :  { %851 = vst [vmem:[#allocation11] sm:$0x3] %v846_v8 }
 0x3d1   :  { %1229 = shalt.err (!%p1226_p2)
}
 0x3d2   :  { %s1230_s5 = scalar_lea.hbm %s1403_s6, 32 }
 0x3d3   :  { %p1231_p3 = scmp.ne.s32.totalorder %s1403_s6, %s1230_s5  ;;  %p1234_p4 = scmp.lt.u32.totalorder %s1230_s5, %s1403_s6 }
 0x3d5   :  { %p1236_p5 = pnand %p1234_p4, %p1231_p3 }
 0x3d7   :  { %1239 = shalt.err (!%p1236_p5)
}
 0x3d8   :  { %861 = dma.vmem_to_hbm [thread:$0]  %s859_s18, 32, %s1403_s6, [#allocation4]  }
 0x3d9   :  { %1246 = dma.done.wait [#allocation4], 32  }
 0x3da   :  { %1247 = vsyncadd [#allocation4], 4294967264 }
 0x3db   :  { %865 = vsyncpa [#allocation3], 1 }
 0x3dc   :  { %866 = vsyncpa [#allocation6], 1 }
 0x3dd   :  { %867 = vsyncpa [#allocation9], 1 }
 0x3de   :  { %868 = vsyncpa [#allocation4], 1 }

</bundles_post_ra>
